<compile_context>
chip_gen: v7x
topology: tpu7x:2x2x1
jax: 0.10.0
libtpu: 0.0.40
codegen_flags: <defaults>
</compile_context>

<pallas_src>
import functools

import numpy as np

import jax
import jax.numpy as jnp
from jax.experimental import pallas as pl
from jax.experimental.pallas import tpu as pltpu

PAD = 0  # onmt.Constants.PAD


# ----------------------------------------------------------------------------
# Pallas kernel: recurrent part of one (bi)directional LSTM layer.
# grid = (num_directions, num_time_chunks); h, c persist in VMEM scratch
# across the (sequential, "arbitrary") time-chunk axis.
# ----------------------------------------------------------------------------
def _lstm_recurrent_kernel(gx_ref, whh_ref, out_ref, hn_ref, cn_ref,
                           h_sc, c_sc, *, chunk, seq_len, padded_len):
    d = pl.program_id(0)                  # direction: 0 = forward, 1 = backward
    c = pl.program_id(1)                  # time-chunk (processing order)
    nc = pl.num_programs(1)
    H = h_sc.shape[-1]

    @pl.when(c == 0)
    def _():
        h_sc[...] = jnp.zeros_like(h_sc)
        c_sc[...] = jnp.zeros_like(c_sc)

    h = h_sc[...]                         # (B, H)
    cell = c_sc[...]                      # (B, H)
    whh = whh_ref[...]                    # (H, 4H), VMEM-resident, loaded once/chunk
    reverse = d == 1                      # traced scalar bool
    # data chunk this grid step maps to (must match the BlockSpec index_map)
    data_chunk = jnp.where(reverse, nc - 1 - c, c)
    needs_mask = padded_len != seq_len    # static Python bool

    # `chunk` is small and static -> fully unrolled at trace time.  The local
    # index is traced only because the in-chunk order flips for the backward
    # direction; writes land at forward-time positions so no un-reversal is
    # ever needed.
    for i in range(chunk):
        local = jnp.where(reverse, chunk - 1 - i, i).astype(jnp.int32)
        # Only the h-projection is on the serial path; the x-projection
        # (+ bias) was precomputed outside the kernel.
        gates = gx_ref[local] + jnp.dot(h, whh,
                                        preferred_element_type=jnp.float32)
        i_g = jax.nn.sigmoid(gates[:, 0 * H:1 * H])
        f_g = jax.nn.sigmoid(gates[:, 1 * H:2 * H])
        g_g = jnp.tanh(gates[:, 2 * H:3 * H])
        o_g = jax.nn.sigmoid(gates[:, 3 * H:4 * H])
        c_new = f_g * cell + i_g * g_g
        h_new = o_g * jnp.tanh(c_new)
        if needs_mask:                    # only traced when T was padded
            t_global = data_chunk * chunk + local
            valid = t_global < seq_len
            h_new = jnp.where(valid, h_new, h)
            c_new = jnp.where(valid, c_new, cell)
        h, cell = h_new, c_new
        out_ref[local] = h.astype(out_ref.dtype)

    h_sc[...] = h
    c_sc[...] = cell

    @pl.when(c == nc - 1)
    def _():
        hn_ref[...] = h.astype(hn_ref.dtype)
        cn_ref[...] = cell.astype(cn_ref.dtype)


def lstm_layer_recurrence(gates_x, whh_t, *, chunk_size=16):
    """Run the recurrence of one LSTM layer (all directions) in one kernel.

    gates_x: (num_dir, T, B, 4H) float32 -- precomputed x @ W_ih^T + bias,
             in FORWARD time order for both directions.
    whh_t:   (num_dir, H, 4H) float32    -- W_hh transposed.

    Returns (out (num_dir, T, B, H), h_n (num_dir, B, H), c_n (num_dir, B, H)),
    with out already in forward time order for both directions.
    """
    num_dir, T, B, G = gates_x.shape
    H = whh_t.shape[-2]
    assert G == 4 * H

    chunk = min(chunk_size, T)
    nc = pl.cdiv(T, chunk)
    t_pad = nc * chunk
    if t_pad != T:
        gates_x = jnp.pad(gates_x, ((0, 0), (0, t_pad - T), (0, 0), (0, 0)))

    def x_index(d, c):
        # forward direction walks chunks 0..nc-1, backward walks nc-1..0
        blk = d * (nc - 1 - c) + (1 - d) * c
        return (d, blk, 0, 0)

    def w_index(d, c):
        return (d, 0, 0)

    def state_index(d, c):
        return (d, 0, 0)

    kernel = functools.partial(_lstm_recurrent_kernel,
                               chunk=chunk, seq_len=T, padded_len=t_pad)

    out_shapes = (
        jax.ShapeDtypeStruct((num_dir, t_pad, B, H), jnp.float32),
        jax.ShapeDtypeStruct((num_dir, B, H), jnp.float32),
        jax.ShapeDtypeStruct((num_dir, B, H), jnp.float32),
    )
    grid_spec = pltpu.PrefetchScalarGridSpec(
        num_scalar_prefetch=0,
        grid=(num_dir, nc),
        in_specs=[
            pl.BlockSpec((None, chunk, B, 4 * H), x_index),   # gates_x chunk
            pl.BlockSpec((None, H, 4 * H), w_index),          # W_hh^T resident
        ],
        out_specs=(
            pl.BlockSpec((None, chunk, B, H), x_index),       # outputs chunk
            pl.BlockSpec((None, B, H), state_index),          # h_n
            pl.BlockSpec((None, B, H), state_index),          # c_n
        ),
        scratch_shapes=[
            pltpu.VMEM((B, H), jnp.float32),                  # h carry
            pltpu.VMEM((B, H), jnp.float32),                  # c carry
        ],
    )
    out, hn, cn = pl.pallas_call(
        kernel,
        out_shape=out_shapes,
        grid_spec=grid_spec,
        compiler_params=pltpu.CompilerParams(
            dimension_semantics=("parallel", "arbitrary")),
    )(gates_x, whh_t)
    return out[:, :T], hn, cn


# ----------------------------------------------------------------------------
# LSTMEncoder forward (glue in plain JAX; recurrence in the Pallas kernel)
# ----------------------------------------------------------------------------
def init_params(key, vocab_size, word_vec_size, rnn_size, layers, brnn):
    num_directions = 2 if brnn else 1
    assert rnn_size % num_directions == 0
    hidden = rnn_size // num_directions

    keys = jax.random.split(key, 1 + layers * num_directions * 4)
    kiter = iter(keys)

    emb = jax.random.normal(next(kiter), (vocab_size, word_vec_size),
                            dtype=jnp.float32)
    emb = emb.at[PAD].set(0.0)                 # padding_idx row is zero

    bound = 1.0 / float(np.sqrt(hidden))
    rnn = []
    for layer in range(layers):
        d_in = word_vec_size if layer == 0 else hidden * num_directions
        dirs = []
        for _ in range(num_directions):
            w_ih = jax.random.uniform(next(kiter), (4 * hidden, d_in),
                                      minval=-bound, maxval=bound)
            w_hh = jax.random.uniform(next(kiter), (4 * hidden, hidden),
                                      minval=-bound, maxval=bound)
            b_ih = jax.random.uniform(next(kiter), (4 * hidden,),
                                      minval=-bound, maxval=bound)
            b_hh = jax.random.uniform(next(kiter), (4 * hidden,),
                                      minval=-bound, maxval=bound)
            dirs.append((w_ih, w_hh, b_ih, b_hh))
        rnn.append(dirs)
    return {"embedding": emb, "rnn": rnn,
            "layers": layers, "num_directions": num_directions,
            "hidden": hidden}


def lstm_encoder_forward(params, tokens, *, chunk_size=16):
    """tokens: (T, B) int32.  Returns (outputs, (h_n, c_n)) like the module."""
    layers = params["layers"]
    num_dir = params["num_directions"]

    x = params["embedding"][tokens]                       # (T, B, E)

    h_list, c_list = [], []
    for layer in range(layers):
        dirs = params["rnn"][layer]
        wih_t = jnp.stack([jnp.transpose(dirs[d][0]) for d in range(num_dir)])
        whh_t = jnp.stack([jnp.transpose(dirs[d][1]) for d in range(num_dir)])
        bias = jnp.stack([dirs[d][2] + dirs[d][3] for d in range(num_dir)])

        # Hoisted, time-parallel input projection: one big MXU-friendly matmul
        # over all timesteps, with the summed bias folded in.
        gates_x = (jnp.einsum('tbd,zdg->ztbg', x.astype(jnp.float32), wih_t)
                   + bias[:, None, None, :])              # (num_dir, T, B, 4H)

        out, hn, cn = lstm_layer_recurrence(gates_x, whh_t,
                                            chunk_size=chunk_size)
        h_list.append(hn)
        c_list.append(cn)

        # Concatenate direction outputs (fwd, bwd) along features.
        x = (out[0] if num_dir == 1
             else jnp.concatenate([out[0], out[1]], axis=-1))  # (T, B, dir*H)
        # TODO(synk): inter-layer dropout (training-only) not implemented.

    outputs = x                                           # (T, B, H*num_dir)
    hidden_t = (jnp.concatenate(h_list, axis=0),          # (layers*dir, B, H)
                jnp.concatenate(c_list, axis=0))
    return outputs, hidden_t


# ----------------------------------------------------------------------------
# Pure-JAX reference (mirrors nn.LSTM semantics) for a correctness check.
# ----------------------------------------------------------------------------
def _reference_lstm_encoder(params, tokens):
    x = params["embedding"][tokens]
    num_dir = params["num_directions"]
    H = params["hidden"]
    T, B, _ = x.shape
    h_list, c_list = [], []
    for layer in range(params["layers"]):
        outs = []
        for d in range(num_dir):
            w_ih, w_hh, b_ih, b_hh = params["rnn"][layer][d]
            h = jnp.zeros((B, H), jnp.float32)
            c = jnp.zeros((B, H), jnp.float32)
            order = range(T) if d == 0 else range(T - 1, -1, -1)
            out_d = [None] * T
            for t in order:
                gates = x[t] @ w_ih.T + h @ w_hh.T + b_ih + b_hh
                i_g = jax.nn.sigmoid(gates[:, 0 * H:1 * H])
                f_g = jax.nn.sigmoid(gates[:, 1 * H:2 * H])
                g_g = jnp.tanh(gates[:, 2 * H:3 * H])
                o_g = jax.nn.sigmoid(gates[:, 3 * H:4 * H])
                c = f_g * c + i_g * g_g
                h = o_g * jnp.tanh(c)
                out_d[t] = h
            outs.append(jnp.stack(out_d, 0))
            h_list.append(h)
            c_list.append(c)
        x = outs[0] if num_dir == 1 else jnp.concatenate(outs, -1)
    return x, (jnp.stack(h_list, 0), jnp.stack(c_list, 0))


if __name__ == "__main__":
    # Small config consistent with the module's __init__:
    #   opt.layers=2, opt.brnn=True, opt.rnn_size=64, opt.word_vec_size=32
    vocab_size = 20
    word_vec_size = 32
    rnn_size = 64
    layers = 2
    brnn = True
    T, B = 8, 2

    key = jax.random.PRNGKey(0)
    pkey, tkey = jax.random.split(key)
    params = init_params(pkey, vocab_size, word_vec_size, rnn_size,
                         layers, brnn)
    tokens = jax.random.randint(tkey, (T, B), 0, vocab_size, dtype=jnp.int32)

    @jax.jit
    def run(tok):
        return lstm_encoder_forward(params, tok)

    outputs, (h_n, c_n) = run(tokens)
    jax.block_until_ready((outputs, h_n, c_n))

    num_dir = 2 if brnn else 1
    assert outputs.shape == (T, B, rnn_size)
    assert h_n.shape == (layers * num_dir, B, rnn_size // num_dir)
    assert c_n.shape == h_n.shape

    # Correctness check against a pure-JAX reference (loose tolerance for
    # TPU matmul precision differences).
    ref_out, (ref_h, ref_c) = _reference_lstm_encoder(params, tokens)
    np.testing.assert_allclose(np.asarray(outputs), np.asarray(ref_out),
                               rtol=5e-3, atol=5e-3)
    np.testing.assert_allclose(np.asarray(h_n), np.asarray(ref_h),
                               rtol=5e-3, atol=5e-3)
    np.testing.assert_allclose(np.asarray(c_n), np.asarray(ref_c),
                               rtol=5e-3, atol=5e-3)

    print("KERNEL_OK")
</pallas_src>

<mosaic_0001>
module attributes {stable_mosaic.version = 11 : i64} {
  func.func @_lstm_recurrent_kernel(%arg0: i32, %arg1: i32, %arg2: memref<1x8x2x128xf32, #tpu.memory_space<vmem>>, %arg3: memref<1x32x128xf32, #tpu.memory_space<vmem>>, %arg4: memref<1x8x2x32xf32, #tpu.memory_space<vmem>>, %arg5: memref<1x2x32xf32, #tpu.memory_space<vmem>>, %arg6: memref<1x2x32xf32, #tpu.memory_space<vmem>>, %arg7: memref<2x32xf32, #tpu.memory_space<vmem>>, %arg8: memref<2x32xf32, #tpu.memory_space<vmem>>) attributes {dimension_semantics = [#tpu.dimension_semantics<parallel>, #tpu.dimension_semantics<arbitrary>], iteration_bounds = array<i64: 2, 1>, scalar_prefetch = 0 : i64, scratch_operands = 2 : i64, tpu.core_type = #tpu.core_type<tc>, window_params = [{transform_indices = @transform_0, window_bounds = array<i64: 1, 8, 2, 128>}, {transform_indices = @transform_1, window_bounds = array<i64: 1, 32, 128>}, {transform_indices = @transform_2, window_bounds = array<i64: 1, 8, 2, 32>}, {transform_indices = @transform_3, window_bounds = array<i64: 1, 2, 32>}, {transform_indices = @transform_4, window_bounds = array<i64: 1, 2, 32>}]} {
    %c0_i32 = arith.constant 0 : i32
    %0 = arith.cmpi eq, %arg1, %c0_i32 : i32
    %1 = arith.extui %0 : i1 to i32
    %c0_i32_0 = arith.constant 0 : i32
    %2 = arith.cmpi ne, %1, %c0_i32_0 : i32
    scf.if %2 {
      %cst_102 = arith.constant 0.000000e+00 : f32
      %293 = vector.broadcast %cst_102 : f32 to vector<2x32xf32>
      %c0_103 = arith.constant 0 : index
      %c0_104 = arith.constant 0 : index
      %294 = vector.load %arg7[%c0_103, %c0_104] : memref<2x32xf32, #tpu.memory_space<vmem>>, vector<2x32xf32>
      tpu.vector_store %arg7[%c0_103, %c0_104], %293 {strides = array<i32>} : memref<2x32xf32, #tpu.memory_space<vmem>>, vector<2x32xf32>,
      %cst_105 = arith.constant 0.000000e+00 : f32
      %295 = vector.broadcast %cst_105 : f32 to vector<2x32xf32>
      %c0_106 = arith.constant 0 : index
      %c0_107 = arith.constant 0 : index
      %296 = vector.load %arg8[%c0_106, %c0_107] : memref<2x32xf32, #tpu.memory_space<vmem>>, vector<2x32xf32>
      tpu.vector_store %arg8[%c0_106, %c0_107], %295 {strides = array<i32>} : memref<2x32xf32, #tpu.memory_space<vmem>>, vector<2x32xf32>,
    } else {
    }
    %c0 = arith.constant 0 : index
    %c0_1 = arith.constant 0 : index
    %3 = vector.load %arg7[%c0, %c0_1] : memref<2x32xf32, #tpu.memory_space<vmem>>, vector<2x32xf32>
    %c0_2 = arith.constant 0 : index
    %c0_3 = arith.constant 0 : index
    %4 = vector.load %arg8[%c0_2, %c0_3] : memref<2x32xf32, #tpu.memory_space<vmem>>, vector<2x32xf32>
    %c0_4 = arith.constant 0 : index
    %c0_5 = arith.constant 0 : index
    %c0_6 = arith.constant 0 : index
    %5 = vector.load %arg3[%c0_4, %c0_5, %c0_6] : memref<1x32x128xf32, #tpu.memory_space<vmem>>, vector<1x32x128xf32>
    %6 = vector.shape_cast %5 : vector<1x32x128xf32> to vector<32x128xf32>
    %c1_i32 = arith.constant 1 : i32
    %7 = arith.cmpi eq, %arg0, %c1_i32 : i32
    %c7_i32 = arith.constant 7 : i32
    %c0_i32_7 = arith.constant 0 : i32
    %8 = arith.select %7, %c7_i32, %c0_i32_7 : i32
    %c0_8 = arith.constant 0 : index
    %9 = arith.index_cast %8 : i32 to index
    %c0_9 = arith.constant 0 : index
    %c0_10 = arith.constant 0 : index
    %10 = vector.load %arg2[%c0_8, %9, %c0_9, %c0_10] : memref<1x8x2x128xf32, #tpu.memory_space<vmem>>, vector<1x1x2x128xf32>
    %11 = vector.shape_cast %10 : vector<1x1x2x128xf32> to vector<2x128xf32>
    %cst = arith.constant dense<0.000000e+00> : vector<2x128xf32>
    %12 = tpu.matmul %3, %6, %cst {dimension_numbers = #tpu.dot_dimension_numbers<[1], [0], [0], [1], [0, 0, 1, 1], [], []>} : vector<2x32xf32>, vector<32x128xf32>, vector<2x128xf32> -> vector<2x128xf32>
    %13 = arith.addf %11, %12 : vector<2x128xf32>
    %14 = vector.extract_strided_slice %13 {offsets = [0, 0], sizes = [2, 32], strides = [1, 1]} : vector<2x128xf32> to vector<2x32xf32>
    %15 = arith.negf %14 : vector<2x32xf32>
    %16 = math.exp %15 : vector<2x32xf32>
    %cst_11 = arith.constant 1.000000e+00 : f32
    %17 = vector.broadcast %cst_11 : f32 to vector<2x32xf32>
    %18 = arith.addf %17, %16 : vector<2x32xf32>
    %19 = arith.divf %17, %18 : vector<2x32xf32>
    %20 = vector.extract_strided_slice %13 {offsets = [0, 32], sizes = [2, 32], strides = [1, 1]} : vector<2x128xf32> to vector<2x32xf32>
    %21 = arith.negf %20 : vector<2x32xf32>
    %22 = math.exp %21 : vector<2x32xf32>
    %cst_12 = arith.constant 1.000000e+00 : f32
    %23 = vector.broadcast %cst_12 : f32 to vector<2x32xf32>
    %24 = arith.addf %23, %22 : vector<2x32xf32>
    %25 = arith.divf %23, %24 : vector<2x32xf32>
    %26 = vector.extract_strided_slice %13 {offsets = [0, 64], sizes = [2, 32], strides = [1, 1]} : vector<2x128xf32> to vector<2x32xf32>
    %27 = math.tanh %26 : vector<2x32xf32>
    %28 = vector.extract_strided_slice %13 {offsets = [0, 96], sizes = [2, 32], strides = [1, 1]} : vector<2x128xf32> to vector<2x32xf32>
    %29 = arith.negf %28 : vector<2x32xf32>
    %30 = math.exp %29 : vector<2x32xf32>
    %cst_13 = arith.constant 1.000000e+00 : f32
    %31 = vector.broadcast %cst_13 : f32 to vector<2x32xf32>
    %32 = arith.addf %31, %30 : vector<2x32xf32>
    %33 = arith.divf %31, %32 : vector<2x32xf32>
    %34 = arith.mulf %25, %4 : vector<2x32xf32>
    %35 = arith.mulf %19, %27 : vector<2x32xf32>
    %36 = arith.addf %34, %35 : vector<2x32xf32>
    %37 = math.tanh %36 : vector<2x32xf32>
    %38 = arith.mulf %33, %37 : vector<2x32xf32>
    %c0_14 = arith.constant 0 : index
    %39 = arith.index_cast %8 : i32 to index
    %c0_15 = arith.constant 0 : index
    %c0_16 = arith.constant 0 : index
    %40 = vector.load %arg4[%c0_14, %39, %c0_15, %c0_16] : memref<1x8x2x32xf32, #tpu.memory_space<vmem>>, vector<1x1x2x32xf32>
    %41 = vector.shape_cast %40 : vector<1x1x2x32xf32> to vector<2x32xf32>
    %42 = vector.shape_cast %38 : vector<2x32xf32> to vector<1x1x2x32xf32>
    tpu.vector_store %arg4[%c0_14, %39, %c0_15, %c0_16], %42 {strides = array<i32>} : memref<1x8x2x32xf32, #tpu.memory_space<vmem>>, vector<1x1x2x32xf32>,
    %c6_i32 = arith.constant 6 : i32
    %c1_i32_17 = arith.constant 1 : i32
    %43 = arith.select %7, %c6_i32, %c1_i32_17 : i32
    %c0_18 = arith.constant 0 : index
    %44 = arith.index_cast %43 : i32 to index
    %c0_19 = arith.constant 0 : index
    %c0_20 = arith.constant 0 : index
    %45 = vector.load %arg2[%c0_18, %44, %c0_19, %c0_20] : memref<1x8x2x128xf32, #tpu.memory_space<vmem>>, vector<1x1x2x128xf32>
    %46 = vector.shape_cast %45 : vector<1x1x2x128xf32> to vector<2x128xf32>
    %cst_21 = arith.constant dense<0.000000e+00> : vector<2x128xf32>
    %47 = tpu.matmul %38, %6, %cst_21 {dimension_numbers = #tpu.dot_dimension_numbers<[1], [0], [0], [1], [0, 0, 1, 1], [], []>} : vector<2x32xf32>, vector<32x128xf32>, vector<2x128xf32> -> vector<2x128xf32>
    %48 = arith.addf %46, %47 : vector<2x128xf32>
    %49 = vector.extract_strided_slice %48 {offsets = [0, 0], sizes = [2, 32], strides = [1, 1]} : vector<2x128xf32> to vector<2x32xf32>
    %50 = arith.negf %49 : vector<2x32xf32>
    %51 = math.exp %50 : vector<2x32xf32>
    %cst_22 = arith.constant 1.000000e+00 : f32
    %52 = vector.broadcast %cst_22 : f32 to vector<2x32xf32>
    %53 = arith.addf %52, %51 : vector<2x32xf32>
    %54 = arith.divf %52, %53 : vector<2x32xf32>
    %55 = vector.extract_strided_slice %48 {offsets = [0, 32], sizes = [2, 32], strides = [1, 1]} : vector<2x128xf32> to vector<2x32xf32>
    %56 = arith.negf %55 : vector<2x32xf32>
    %57 = math.exp %56 : vector<2x32xf32>
    %cst_23 = arith.constant 1.000000e+00 : f32
    %58 = vector.broadcast %cst_23 : f32 to vector<2x32xf32>
    %59 = arith.addf %58, %57 : vector<2x32xf32>
    %60 = arith.divf %58, %59 : vector<2x32xf32>
    %61 = vector.extract_strided_slice %48 {offsets = [0, 64], sizes = [2, 32], strides = [1, 1]} : vector<2x128xf32> to vector<2x32xf32>
    %62 = math.tanh %61 : vector<2x32xf32>
    %63 = vector.extract_strided_slice %48 {offsets = [0, 96], sizes = [2, 32], strides = [1, 1]} : vector<2x128xf32> to vector<2x32xf32>
    %64 = arith.negf %63 : vector<2x32xf32>
    %65 = math.exp %64 : vector<2x32xf32>
    %cst_24 = arith.constant 1.000000e+00 : f32
    %66 = vector.broadcast %cst_24 : f32 to vector<2x32xf32>
    %67 = arith.addf %66, %65 : vector<2x32xf32>
    %68 = arith.divf %66, %67 : vector<2x32xf32>
    %69 = arith.mulf %60, %36 : vector<2x32xf32>
    %70 = arith.mulf %54, %62 : vector<2x32xf32>
    %71 = arith.addf %69, %70 : vector<2x32xf32>
    %72 = math.tanh %71 : vector<2x32xf32>
    %73 = arith.mulf %68, %72 : vector<2x32xf32>
    %c0_25 = arith.constant 0 : index
    %74 = arith.index_cast %43 : i32 to index
    %c0_26 = arith.constant 0 : index
    %c0_27 = arith.constant 0 : index
    %75 = vector.load %arg4[%c0_25, %74, %c0_26, %c0_27] : memref<1x8x2x32xf32, #tpu.memory_space<vmem>>, vector<1x1x2x32xf32>
    %76 = vector.shape_cast %75 : vector<1x1x2x32xf32> to vector<2x32xf32>
    %77 = vector.shape_cast %73 : vector<2x32xf32> to vector<1x1x2x32xf32>
    tpu.vector_store %arg4[%c0_25, %74, %c0_26, %c0_27], %77 {strides = array<i32>} : memref<1x8x2x32xf32, #tpu.memory_space<vmem>>, vector<1x1x2x32xf32>,
    %c5_i32 = arith.constant 5 : i32
    %c2_i32 = arith.constant 2 : i32
    %78 = arith.select %7, %c5_i32, %c2_i32 : i32
    %c0_28 = arith.constant 0 : index
    %79 = arith.index_cast %78 : i32 to index
    %c0_29 = arith.constant 0 : index
    %c0_30 = arith.constant 0 : index
    %80 = vector.load %arg2[%c0_28, %79, %c0_29, %c0_30] : memref<1x8x2x128xf32, #tpu.memory_space<vmem>>, vector<1x1x2x128xf32>
    %81 = vector.shape_cast %80 : vector<1x1x2x128xf32> to vector<2x128xf32>
    %cst_31 = arith.constant dense<0.000000e+00> : vector<2x128xf32>
    %82 = tpu.matmul %73, %6, %cst_31 {dimension_numbers = #tpu.dot_dimension_numbers<[1], [0], [0], [1], [0, 0, 1, 1], [], []>} : vector<2x32xf32>, vector<32x128xf32>, vector<2x128xf32> -> vector<2x128xf32>
    %83 = arith.addf %81, %82 : vector<2x128xf32>
    %84 = vector.extract_strided_slice %83 {offsets = [0, 0], sizes = [2, 32], strides = [1, 1]} : vector<2x128xf32> to vector<2x32xf32>
    %85 = arith.negf %84 : vector<2x32xf32>
    %86 = math.exp %85 : vector<2x32xf32>
    %cst_32 = arith.constant 1.000000e+00 : f32
    %87 = vector.broadcast %cst_32 : f32 to vector<2x32xf32>
    %88 = arith.addf %87, %86 : vector<2x32xf32>
    %89 = arith.divf %87, %88 : vector<2x32xf32>
    %90 = vector.extract_strided_slice %83 {offsets = [0, 32], sizes = [2, 32], strides = [1, 1]} : vector<2x128xf32> to vector<2x32xf32>
    %91 = arith.negf %90 : vector<2x32xf32>
    %92 = math.exp %91 : vector<2x32xf32>
    %cst_33 = arith.constant 1.000000e+00 : f32
    %93 = vector.broadcast %cst_33 : f32 to vector<2x32xf32>
    %94 = arith.addf %93, %92 : vector<2x32xf32>
    %95 = arith.divf %93, %94 : vector<2x32xf32>
    %96 = vector.extract_strided_slice %83 {offsets = [0, 64], sizes = [2, 32], strides = [1, 1]} : vector<2x128xf32> to vector<2x32xf32>
    %97 = math.tanh %96 : vector<2x32xf32>
    %98 = vector.extract_strided_slice %83 {offsets = [0, 96], sizes = [2, 32], strides = [1, 1]} : vector<2x128xf32> to vector<2x32xf32>
    %99 = arith.negf %98 : vector<2x32xf32>
    %100 = math.exp %99 : vector<2x32xf32>
    %cst_34 = arith.constant 1.000000e+00 : f32
    %101 = vector.broadcast %cst_34 : f32 to vector<2x32xf32>
    %102 = arith.addf %101, %100 : vector<2x32xf32>
    %103 = arith.divf %101, %102 : vector<2x32xf32>
    %104 = arith.mulf %95, %71 : vector<2x32xf32>
    %105 = arith.mulf %89, %97 : vector<2x32xf32>
    %106 = arith.addf %104, %105 : vector<2x32xf32>
    %107 = math.tanh %106 : vector<2x32xf32>
    %108 = arith.mulf %103, %107 : vector<2x32xf32>
    %c0_35 = arith.constant 0 : index
    %109 = arith.index_cast %78 : i32 to index
    %c0_36 = arith.constant 0 : index
    %c0_37 = arith.constant 0 : index
    %110 = vector.load %arg4[%c0_35, %109, %c0_36, %c0_37] : memref<1x8x2x32xf32, #tpu.memory_space<vmem>>, vector<1x1x2x32xf32>
    %111 = vector.shape_cast %110 : vector<1x1x2x32xf32> to vector<2x32xf32>
    %112 = vector.shape_cast %108 : vector<2x32xf32> to vector<1x1x2x32xf32>
    tpu.vector_store %arg4[%c0_35, %109, %c0_36, %c0_37], %112 {strides = array<i32>} : memref<1x8x2x32xf32, #tpu.memory_space<vmem>>, vector<1x1x2x32xf32>,
    %c4_i32 = arith.constant 4 : i32
    %c3_i32 = arith.constant 3 : i32
    %113 = arith.select %7, %c4_i32, %c3_i32 : i32
    %c0_38 = arith.constant 0 : index
    %114 = arith.index_cast %113 : i32 to index
    %c0_39 = arith.constant 0 : index
    %c0_40 = arith.constant 0 : index
    %115 = vector.load %arg2[%c0_38, %114, %c0_39, %c0_40] : memref<1x8x2x128xf32, #tpu.memory_space<vmem>>, vector<1x1x2x128xf32>
    %116 = vector.shape_cast %115 : vector<1x1x2x128xf32> to vector<2x128xf32>
    %cst_41 = arith.constant dense<0.000000e+00> : vector<2x128xf32>
    %117 = tpu.matmul %108, %6, %cst_41 {dimension_numbers = #tpu.dot_dimension_numbers<[1], [0], [0], [1], [0, 0, 1, 1], [], []>} : vector<2x32xf32>, vector<32x128xf32>, vector<2x128xf32> -> vector<2x128xf32>
    %118 = arith.addf %116, %117 : vector<2x128xf32>
    %119 = vector.extract_strided_slice %118 {offsets = [0, 0], sizes = [2, 32], strides = [1, 1]} : vector<2x128xf32> to vector<2x32xf32>
    %120 = arith.negf %119 : vector<2x32xf32>
    %121 = math.exp %120 : vector<2x32xf32>
    %cst_42 = arith.constant 1.000000e+00 : f32
    %122 = vector.broadcast %cst_42 : f32 to vector<2x32xf32>
    %123 = arith.addf %122, %121 : vector<2x32xf32>
    %124 = arith.divf %122, %123 : vector<2x32xf32>
    %125 = vector.extract_strided_slice %118 {offsets = [0, 32], sizes = [2, 32], strides = [1, 1]} : vector<2x128xf32> to vector<2x32xf32>
    %126 = arith.negf %125 : vector<2x32xf32>
    %127 = math.exp %126 : vector<2x32xf32>
    %cst_43 = arith.constant 1.000000e+00 : f32
    %128 = vector.broadcast %cst_43 : f32 to vector<2x32xf32>
    %129 = arith.addf %128, %127 : vector<2x32xf32>
    %130 = arith.divf %128, %129 : vector<2x32xf32>
    %131 = vector.extract_strided_slice %118 {offsets = [0, 64], sizes = [2, 32], strides = [1, 1]} : vector<2x128xf32> to vector<2x32xf32>
    %132 = math.tanh %131 : vector<2x32xf32>
    %133 = vector.extract_strided_slice %118 {offsets = [0, 96], sizes = [2, 32], strides = [1, 1]} : vector<2x128xf32> to vector<2x32xf32>
    %134 = arith.negf %133 : vector<2x32xf32>
    %135 = math.exp %134 : vector<2x32xf32>
    %cst_44 = arith.constant 1.000000e+00 : f32
    %136 = vector.broadcast %cst_44 : f32 to vector<2x32xf32>
    %137 = arith.addf %136, %135 : vector<2x32xf32>
    %138 = arith.divf %136, %137 : vector<2x32xf32>
    %139 = arith.mulf %130, %106 : vector<2x32xf32>
    %140 = arith.mulf %124, %132 : vector<2x32xf32>
    %141 = arith.addf %139, %140 : vector<2x32xf32>
    %142 = math.tanh %141 : vector<2x32xf32>
    %143 = arith.mulf %138, %142 : vector<2x32xf32>
    %c0_45 = arith.constant 0 : index
    %144 = arith.index_cast %113 : i32 to index
    %c0_46 = arith.constant 0 : index
    %c0_47 = arith.constant 0 : index
    %145 = vector.load %arg4[%c0_45, %144, %c0_46, %c0_47] : memref<1x8x2x32xf32, #tpu.memory_space<vmem>>, vector<1x1x2x32xf32>
    %146 = vector.shape_cast %145 : vector<1x1x2x32xf32> to vector<2x32xf32>
    %147 = vector.shape_cast %143 : vector<2x32xf32> to vector<1x1x2x32xf32>
    tpu.vector_store %arg4[%c0_45, %144, %c0_46, %c0_47], %147 {strides = array<i32>} : memref<1x8x2x32xf32, #tpu.memory_space<vmem>>, vector<1x1x2x32xf32>,
    %c3_i32_48 = arith.constant 3 : i32
    %c4_i32_49 = arith.constant 4 : i32
    %148 = arith.select %7, %c3_i32_48, %c4_i32_49 : i32
    %c0_50 = arith.constant 0 : index
    %149 = arith.index_cast %148 : i32 to index
    %c0_51 = arith.constant 0 : index
    %c0_52 = arith.constant 0 : index
    %150 = vector.load %arg2[%c0_50, %149, %c0_51, %c0_52] : memref<1x8x2x128xf32, #tpu.memory_space<vmem>>, vector<1x1x2x128xf32>
    %151 = vector.shape_cast %150 : vector<1x1x2x128xf32> to vector<2x128xf32>
    %cst_53 = arith.constant dense<0.000000e+00> : vector<2x128xf32>
    %152 = tpu.matmul %143, %6, %cst_53 {dimension_numbers = #tpu.dot_dimension_numbers<[1], [0], [0], [1], [0, 0, 1, 1], [], []>} : vector<2x32xf32>, vector<32x128xf32>, vector<2x128xf32> -> vector<2x128xf32>
    %153 = arith.addf %151, %152 : vector<2x128xf32>
    %154 = vector.extract_strided_slice %153 {offsets = [0, 0], sizes = [2, 32], strides = [1, 1]} : vector<2x128xf32> to vector<2x32xf32>
    %155 = arith.negf %154 : vector<2x32xf32>
    %156 = math.exp %155 : vector<2x32xf32>
    %cst_54 = arith.constant 1.000000e+00 : f32
    %157 = vector.broadcast %cst_54 : f32 to vector<2x32xf32>
    %158 = arith.addf %157, %156 : vector<2x32xf32>
    %159 = arith.divf %157, %158 : vector<2x32xf32>
    %160 = vector.extract_strided_slice %153 {offsets = [0, 32], sizes = [2, 32], strides = [1, 1]} : vector<2x128xf32> to vector<2x32xf32>
    %161 = arith.negf %160 : vector<2x32xf32>
    %162 = math.exp %161 : vector<2x32xf32>
    %cst_55 = arith.constant 1.000000e+00 : f32
    %163 = vector.broadcast %cst_55 : f32 to vector<2x32xf32>
    %164 = arith.addf %163, %162 : vector<2x32xf32>
    %165 = arith.divf %163, %164 : vector<2x32xf32>
    %166 = vector.extract_strided_slice %153 {offsets = [0, 64], sizes = [2, 32], strides = [1, 1]} : vector<2x128xf32> to vector<2x32xf32>
    %167 = math.tanh %166 : vector<2x32xf32>
    %168 = vector.extract_strided_slice %153 {offsets = [0, 96], sizes = [2, 32], strides = [1, 1]} : vector<2x128xf32> to vector<2x32xf32>
    %169 = arith.negf %168 : vector<2x32xf32>
    %170 = math.exp %169 : vector<2x32xf32>
    %cst_56 = arith.constant 1.000000e+00 : f32
    %171 = vector.broadcast %cst_56 : f32 to vector<2x32xf32>
    %172 = arith.addf %171, %170 : vector<2x32xf32>
    %173 = arith.divf %171, %172 : vector<2x32xf32>
    %174 = arith.mulf %165, %141 : vector<2x32xf32>
    %175 = arith.mulf %159, %167 : vector<2x32xf32>
    %176 = arith.addf %174, %175 : vector<2x32xf32>
    %177 = math.tanh %176 : vector<2x32xf32>
    %178 = arith.mulf %173, %177 : vector<2x32xf32>
    %c0_57 = arith.constant 0 : index
    %179 = arith.index_cast %148 : i32 to index
    %c0_58 = arith.constant 0 : index
    %c0_59 = arith.constant 0 : index
    %180 = vector.load %arg4[%c0_57, %179, %c0_58, %c0_59] : memref<1x8x2x32xf32, #tpu.memory_space<vmem>>, vector<1x1x2x32xf32>
    %181 = vector.shape_cast %180 : vector<1x1x2x32xf32> to vector<2x32xf32>
    %182 = vector.shape_cast %178 : vector<2x32xf32> to vector<1x1x2x32xf32>
    tpu.vector_store %arg4[%c0_57, %179, %c0_58, %c0_59], %182 {strides = array<i32>} : memref<1x8x2x32xf32, #tpu.memory_space<vmem>>, vector<1x1x2x32xf32>,
    %c2_i32_60 = arith.constant 2 : i32
    %c5_i32_61 = arith.constant 5 : i32
    %183 = arith.select %7, %c2_i32_60, %c5_i32_61 : i32
    %c0_62 = arith.constant 0 : index
    %184 = arith.index_cast %183 : i32 to index
    %c0_63 = arith.constant 0 : index
    %c0_64 = arith.constant 0 : index
    %185 = vector.load %arg2[%c0_62, %184, %c0_63, %c0_64] : memref<1x8x2x128xf32, #tpu.memory_space<vmem>>, vector<1x1x2x128xf32>
    %186 = vector.shape_cast %185 : vector<1x1x2x128xf32> to vector<2x128xf32>
    %cst_65 = arith.constant dense<0.000000e+00> : vector<2x128xf32>
    %187 = tpu.matmul %178, %6, %cst_65 {dimension_numbers = #tpu.dot_dimension_numbers<[1], [0], [0], [1], [0, 0, 1, 1], [], []>} : vector<2x32xf32>, vector<32x128xf32>, vector<2x128xf32> -> vector<2x128xf32>
    %188 = arith.addf %186, %187 : vector<2x128xf32>
    %189 = vector.extract_strided_slice %188 {offsets = [0, 0], sizes = [2, 32], strides = [1, 1]} : vector<2x128xf32> to vector<2x32xf32>
    %190 = arith.negf %189 : vector<2x32xf32>
    %191 = math.exp %190 : vector<2x32xf32>
    %cst_66 = arith.constant 1.000000e+00 : f32
    %192 = vector.broadcast %cst_66 : f32 to vector<2x32xf32>
    %193 = arith.addf %192, %191 : vector<2x32xf32>
    %194 = arith.divf %192, %193 : vector<2x32xf32>
    %195 = vector.extract_strided_slice %188 {offsets = [0, 32], sizes = [2, 32], strides = [1, 1]} : vector<2x128xf32> to vector<2x32xf32>
    %196 = arith.negf %195 : vector<2x32xf32>
    %197 = math.exp %196 : vector<2x32xf32>
    %cst_67 = arith.constant 1.000000e+00 : f32
    %198 = vector.broadcast %cst_67 : f32 to vector<2x32xf32>
    %199 = arith.addf %198, %197 : vector<2x32xf32>
    %200 = arith.divf %198, %199 : vector<2x32xf32>
    %201 = vector.extract_strided_slice %188 {offsets = [0, 64], sizes = [2, 32], strides = [1, 1]} : vector<2x128xf32> to vector<2x32xf32>
    %202 = math.tanh %201 : vector<2x32xf32>
    %203 = vector.extract_strided_slice %188 {offsets = [0, 96], sizes = [2, 32], strides = [1, 1]} : vector<2x128xf32> to vector<2x32xf32>
    %204 = arith.negf %203 : vector<2x32xf32>
    %205 = math.exp %204 : vector<2x32xf32>
    %cst_68 = arith.constant 1.000000e+00 : f32
    %206 = vector.broadcast %cst_68 : f32 to vector<2x32xf32>
    %207 = arith.addf %206, %205 : vector<2x32xf32>
    %208 = arith.divf %206, %207 : vector<2x32xf32>
    %209 = arith.mulf %200, %176 : vector<2x32xf32>
    %210 = arith.mulf %194, %202 : vector<2x32xf32>
    %211 = arith.addf %209, %210 : vector<2x32xf32>
    %212 = math.tanh %211 : vector<2x32xf32>
    %213 = arith.mulf %208, %212 : vector<2x32xf32>
    %c0_69 = arith.constant 0 : index
    %214 = arith.index_cast %183 : i32 to index
    %c0_70 = arith.constant 0 : index
    %c0_71 = arith.constant 0 : index
    %215 = vector.load %arg4[%c0_69, %214, %c0_70, %c0_71] : memref<1x8x2x32xf32, #tpu.memory_space<vmem>>, vector<1x1x2x32xf32>
    %216 = vector.shape_cast %215 : vector<1x1x2x32xf32> to vector<2x32xf32>
    %217 = vector.shape_cast %213 : vector<2x32xf32> to vector<1x1x2x32xf32>
    tpu.vector_store %arg4[%c0_69, %214, %c0_70, %c0_71], %217 {strides = array<i32>} : memref<1x8x2x32xf32, #tpu.memory_space<vmem>>, vector<1x1x2x32xf32>,
    %c1_i32_72 = arith.constant 1 : i32
    %c6_i32_73 = arith.constant 6 : i32
    %218 = arith.select %7, %c1_i32_72, %c6_i32_73 : i32
    %c0_74 = arith.constant 0 : index
    %219 = arith.index_cast %218 : i32 to index
    %c0_75 = arith.constant 0 : index
    %c0_76 = arith.constant 0 : index
    %220 = vector.load %arg2[%c0_74, %219, %c0_75, %c0_76] : memref<1x8x2x128xf32, #tpu.memory_space<vmem>>, vector<1x1x2x128xf32>
    %221 = vector.shape_cast %220 : vector<1x1x2x128xf32> to vector<2x128xf32>
    %cst_77 = arith.constant dense<0.000000e+00> : vector<2x128xf32>
    %222 = tpu.matmul %213, %6, %cst_77 {dimension_numbers = #tpu.dot_dimension_numbers<[1], [0], [0], [1], [0, 0, 1, 1], [], []>} : vector<2x32xf32>, vector<32x128xf32>, vector<2x128xf32> -> vector<2x128xf32>
    %223 = arith.addf %221, %222 : vector<2x128xf32>
    %224 = vector.extract_strided_slice %223 {offsets = [0, 0], sizes = [2, 32], strides = [1, 1]} : vector<2x128xf32> to vector<2x32xf32>
    %225 = arith.negf %224 : vector<2x32xf32>
    %226 = math.exp %225 : vector<2x32xf32>
    %cst_78 = arith.constant 1.000000e+00 : f32
    %227 = vector.broadcast %cst_78 : f32 to vector<2x32xf32>
    %228 = arith.addf %227, %226 : vector<2x32xf32>
    %229 = arith.divf %227, %228 : vector<2x32xf32>
    %230 = vector.extract_strided_slice %223 {offsets = [0, 32], sizes = [2, 32], strides = [1, 1]} : vector<2x128xf32> to vector<2x32xf32>
    %231 = arith.negf %230 : vector<2x32xf32>
    %232 = math.exp %231 : vector<2x32xf32>
    %cst_79 = arith.constant 1.000000e+00 : f32
    %233 = vector.broadcast %cst_79 : f32 to vector<2x32xf32>
    %234 = arith.addf %233, %232 : vector<2x32xf32>
    %235 = arith.divf %233, %234 : vector<2x32xf32>
    %236 = vector.extract_strided_slice %223 {offsets = [0, 64], sizes = [2, 32], strides = [1, 1]} : vector<2x128xf32> to vector<2x32xf32>
    %237 = math.tanh %236 : vector<2x32xf32>
    %238 = vector.extract_strided_slice %223 {offsets = [0, 96], sizes = [2, 32], strides = [1, 1]} : vector<2x128xf32> to vector<2x32xf32>
    %239 = arith.negf %238 : vector<2x32xf32>
    %240 = math.exp %239 : vector<2x32xf32>
    %cst_80 = arith.constant 1.000000e+00 : f32
    %241 = vector.broadcast %cst_80 : f32 to vector<2x32xf32>
    %242 = arith.addf %241, %240 : vector<2x32xf32>
    %243 = arith.divf %241, %242 : vector<2x32xf32>
    %244 = arith.mulf %235, %211 : vector<2x32xf32>
    %245 = arith.mulf %229, %237 : vector<2x32xf32>
    %246 = arith.addf %244, %245 : vector<2x32xf32>
    %247 = math.tanh %246 : vector<2x32xf32>
    %248 = arith.mulf %243, %247 : vector<2x32xf32>
    %c0_81 = arith.constant 0 : index
    %249 = arith.index_cast %218 : i32 to index
    %c0_82 = arith.constant 0 : index
    %c0_83 = arith.constant 0 : index
    %250 = vector.load %arg4[%c0_81, %249, %c0_82, %c0_83] : memref<1x8x2x32xf32, #tpu.memory_space<vmem>>, vector<1x1x2x32xf32>
    %251 = vector.shape_cast %250 : vector<1x1x2x32xf32> to vector<2x32xf32>
    %252 = vector.shape_cast %248 : vector<2x32xf32> to vector<1x1x2x32xf32>
    tpu.vector_store %arg4[%c0_81, %249, %c0_82, %c0_83], %252 {strides = array<i32>} : memref<1x8x2x32xf32, #tpu.memory_space<vmem>>, vector<1x1x2x32xf32>,
    %c0_i32_84 = arith.constant 0 : i32
    %c7_i32_85 = arith.constant 7 : i32
    %253 = arith.select %7, %c0_i32_84, %c7_i32_85 : i32
    %c0_86 = arith.constant 0 : index
    %254 = arith.index_cast %253 : i32 to index
    %c0_87 = arith.constant 0 : index
    %c0_88 = arith.constant 0 : index
    %255 = vector.load %arg2[%c0_86, %254, %c0_87, %c0_88] : memref<1x8x2x128xf32, #tpu.memory_space<vmem>>, vector<1x1x2x128xf32>
    %256 = vector.shape_cast %255 : vector<1x1x2x128xf32> to vector<2x128xf32>
    %cst_89 = arith.constant dense<0.000000e+00> : vector<2x128xf32>
    %257 = tpu.matmul %248, %6, %cst_89 {dimension_numbers = #tpu.dot_dimension_numbers<[1], [0], [0], [1], [0, 0, 1, 1], [], []>} : vector<2x32xf32>, vector<32x128xf32>, vector<2x128xf32> -> vector<2x128xf32>
    %258 = arith.addf %256, %257 : vector<2x128xf32>
    %259 = vector.extract_strided_slice %258 {offsets = [0, 0], sizes = [2, 32], strides = [1, 1]} : vector<2x128xf32> to vector<2x32xf32>
    %260 = arith.negf %259 : vector<2x32xf32>
    %261 = math.exp %260 : vector<2x32xf32>
    %cst_90 = arith.constant 1.000000e+00 : f32
    %262 = vector.broadcast %cst_90 : f32 to vector<2x32xf32>
    %263 = arith.addf %262, %261 : vector<2x32xf32>
    %264 = arith.divf %262, %263 : vector<2x32xf32>
    %265 = vector.extract_strided_slice %258 {offsets = [0, 32], sizes = [2, 32], strides = [1, 1]} : vector<2x128xf32> to vector<2x32xf32>
    %266 = arith.negf %265 : vector<2x32xf32>
    %267 = math.exp %266 : vector<2x32xf32>
    %cst_91 = arith.constant 1.000000e+00 : f32
    %268 = vector.broadcast %cst_91 : f32 to vector<2x32xf32>
    %269 = arith.addf %268, %267 : vector<2x32xf32>
    %270 = arith.divf %268, %269 : vector<2x32xf32>
    %271 = vector.extract_strided_slice %258 {offsets = [0, 64], sizes = [2, 32], strides = [1, 1]} : vector<2x128xf32> to vector<2x32xf32>
    %272 = math.tanh %271 : vector<2x32xf32>
    %273 = vector.extract_strided_slice %258 {offsets = [0, 96], sizes = [2, 32], strides = [1, 1]} : vector<2x128xf32> to vector<2x32xf32>
    %274 = arith.negf %273 : vector<2x32xf32>
    %275 = math.exp %274 : vector<2x32xf32>
    %cst_92 = arith.constant 1.000000e+00 : f32
    %276 = vector.broadcast %cst_92 : f32 to vector<2x32xf32>
    %277 = arith.addf %276, %275 : vector<2x32xf32>
    %278 = arith.divf %276, %277 : vector<2x32xf32>
    %279 = arith.mulf %270, %246 : vector<2x32xf32>
    %280 = arith.mulf %264, %272 : vector<2x32xf32>
    %281 = arith.addf %279, %280 : vector<2x32xf32>
    %282 = math.tanh %281 : vector<2x32xf32>
    %283 = arith.mulf %278, %282 : vector<2x32xf32>
    %c0_93 = arith.constant 0 : index
    %284 = arith.index_cast %253 : i32 to index
    %c0_94 = arith.constant 0 : index
    %c0_95 = arith.constant 0 : index
    %285 = vector.load %arg4[%c0_93, %284, %c0_94, %c0_95] : memref<1x8x2x32xf32, #tpu.memory_space<vmem>>, vector<1x1x2x32xf32>
    %286 = vector.shape_cast %285 : vector<1x1x2x32xf32> to vector<2x32xf32>
    %287 = vector.shape_cast %283 : vector<2x32xf32> to vector<1x1x2x32xf32>
    tpu.vector_store %arg4[%c0_93, %284, %c0_94, %c0_95], %287 {strides = array<i32>} : memref<1x8x2x32xf32, #tpu.memory_space<vmem>>, vector<1x1x2x32xf32>,
    %c0_96 = arith.constant 0 : index
    %c0_97 = arith.constant 0 : index
    %288 = vector.load %arg7[%c0_96, %c0_97] : memref<2x32xf32, #tpu.memory_space<vmem>>, vector<2x32xf32>
    tpu.vector_store %arg7[%c0_96, %c0_97], %283 {strides = array<i32>} : memref<2x32xf32, #tpu.memory_space<vmem>>, vector<2x32xf32>,
    %c0_98 = arith.constant 0 : index
    %c0_99 = arith.constant 0 : index
    %289 = vector.load %arg8[%c0_98, %c0_99] : memref<2x32xf32, #tpu.memory_space<vmem>>, vector<2x32xf32>
    tpu.vector_store %arg8[%c0_98, %c0_99], %281 {strides = array<i32>} : memref<2x32xf32, #tpu.memory_space<vmem>>, vector<2x32xf32>,
    %c0_i32_100 = arith.constant 0 : i32
    %290 = arith.cmpi eq, %arg1, %c0_i32_100 : i32
    %291 = arith.extui %290 : i1 to i32
    %c0_i32_101 = arith.constant 0 : i32
    %292 = arith.cmpi ne, %291, %c0_i32_101 : i32
    scf.if %292 {
      %c0_102 = arith.constant 0 : index
      %c0_103 = arith.constant 0 : index
      %c0_104 = arith.constant 0 : index
      %293 = vector.load %arg5[%c0_102, %c0_103, %c0_104] : memref<1x2x32xf32, #tpu.memory_space<vmem>>, vector<1x2x32xf32>
      %294 = vector.shape_cast %293 : vector<1x2x32xf32> to vector<2x32xf32>
      %295 = vector.shape_cast %283 : vector<2x32xf32> to vector<1x2x32xf32>
      tpu.vector_store %arg5[%c0_102, %c0_103, %c0_104], %295 {strides = array<i32>} : memref<1x2x32xf32, #tpu.memory_space<vmem>>, vector<1x2x32xf32>,
      %c0_105 = arith.constant 0 : index
      %c0_106 = arith.constant 0 : index
      %c0_107 = arith.constant 0 : index
      %296 = vector.load %arg6[%c0_105, %c0_106, %c0_107] : memref<1x2x32xf32, #tpu.memory_space<vmem>>, vector<1x2x32xf32>
      %297 = vector.shape_cast %296 : vector<1x2x32xf32> to vector<2x32xf32>
      %298 = vector.shape_cast %281 : vector<2x32xf32> to vector<1x2x32xf32>
      tpu.vector_store %arg6[%c0_105, %c0_106, %c0_107], %298 {strides = array<i32>} : memref<1x2x32xf32, #tpu.memory_space<vmem>>, vector<1x2x32xf32>,
    } else {
    }
    return
  }
  func.func @transform_0(%arg0: i32, %arg1: i32) -> (i32, i32, i32, i32) {
    %c0_i32 = arith.constant 0 : i32
    %0 = arith.subi %c0_i32, %arg1 : i32
    %1 = arith.muli %arg0, %0 : i32
    %c1_i32 = arith.constant 1 : i32
    %2 = arith.subi %c1_i32, %arg0 : i32
    %3 = arith.muli %2, %arg1 : i32
    %4 = arith.addi %1, %3 : i32
    %c0_i32_0 = arith.constant 0 : i32
    %c0_i32_1 = arith.constant 0 : i32
    %c0_i32_2 = arith.constant 0 : i32
    return %arg0, %4, %c0_i32_0, %c0_i32_1 : i32, i32, i32, i32
  }
  func.func @transform_1(%arg0: i32, %arg1: i32) -> (i32, i32, i32) {
    %c0_i32 = arith.constant 0 : i32
    %c0_i32_0 = arith.constant 0 : i32
    %c0_i32_1 = arith.constant 0 : i32
    return %arg0, %c0_i32, %c0_i32_0 : i32, i32, i32
  }
  func.func @transform_2(%arg0: i32, %arg1: i32) -> (i32, i32, i32, i32) {
    %c0_i32 = arith.constant 0 : i32
    %0 = arith.subi %c0_i32, %arg1 : i32
    %1 = arith.muli %arg0, %0 : i32
    %c1_i32 = arith.constant 1 : i32
    %2 = arith.subi %c1_i32, %arg0 : i32
    %3 = arith.muli %2, %arg1 : i32
    %4 = arith.addi %1, %3 : i32
    %c0_i32_0 = arith.constant 0 : i32
    %c0_i32_1 = arith.constant 0 : i32
    %c0_i32_2 = arith.constant 0 : i32
    return %arg0, %4, %c0_i32_0, %c0_i32_1 : i32, i32, i32, i32
  }
  func.func @transform_3(%arg0: i32, %arg1: i32) -> (i32, i32, i32) {
    %c0_i32 = arith.constant 0 : i32
    %c0_i32_0 = arith.constant 0 : i32
    %c0_i32_1 = arith.constant 0 : i32
    return %arg0, %c0_i32, %c0_i32_0 : i32, i32, i32
  }
  func.func @transform_4(%arg0: i32, %arg1: i32) -> (i32, i32, i32) {
    %c0_i32 = arith.constant 0 : i32
    %c0_i32_0 = arith.constant 0 : i32
    %c0_i32_1 = arith.constant 0 : i32
    return %arg0, %c0_i32, %c0_i32_0 : i32, i32, i32
  }
}

</mosaic_0001>

<bundles_post_ra>
// kernel: run.2
= control target key start
LH: loop header
LB: loop body
LE: loop exit
PB: predicated region body
PF: predicated region fallthrough
CT: control target
= control target key end

     0   :  { %s1801_s15 = smov 0   ;;  %s1803_s16 = smov 0   ;;  %s2034_s0 = inlined_call_operand.vmem [shape: f32[2,8,2,128], index: 0, kind: input, shape index: {}]   ;;  %s2035_s1 = inlined_call_operand.vmem [shape: f32[2,32,128], index: 1, kind: input, shape index: {}]   ;;  %s2036_s2 = inlined_call_operand.vmem [shape: f32[2,8,2,32], index: 2, kind: output, shape index: {0}]   ;;  %s2037_s3 = inlined_call_operand.vmem [shape: f32[2,2,32], index: 3, kind: output, shape index: {1}]   ;;  %s2038_s4 = inlined_call_operand.vmem [shape: f32[2,2,32], index: 4, kind: output, shape index: {2}]  }
   0x1   :  { %s1805_s17 = smov 0  }
   0x2 LB: > { %s27_s18 = sadd.s32 1, %s1764_s16  ;;  %p1438_p0 = scmp.ge.s32.totalorder %s1768_s17, 1  ;;  %s1768_s17 = sphi %s1805_s17, %s15_s17   ;;  %s1764_s16 = sphi %s1803_s16, %s2040_s16   ;;  %s1760_s15 = sphi %s1801_s15, %s2039_s15  }
   0x3   : > { %p29_p1 = scmp.ge.s32.totalorder %s27_s18, 2  ;;  %p228_p2 = scmp.lt.s32.totalorder %s1768_s17, 3 }
   0x5   : > { %s2042_s18 = smov (%p29_p1, %s27_s18), 0  ;;  %p229_p3 = pnand %p1438_p0, %p228_p2 }
   0x6   : > { %p291_p4 = scmp.lt.s32.totalorder (!%p229_p3), %s1760_s15, 1  ;;  %vm342_vm0 = vcmask (!%p229_p3), 254976   ;;  %v1770_v0 = vmov (!%p229_p3), 0.0|0.0   ;;  %vm1771_vm1 = vmmov (!%p229_p3), 0   ;;  %v1772_v1 = vmov (!%p229_p3), 0.0   ;;  %p351_p5 = scmp.eq.s32.totalorder (!%p229_p3), %s1760_s15, 1 }
   0x7   : > { %232 = sbr.rel (%p229_p3) target bundleno = 5646 (0x160e), region = 28  ;;  %1604 = vmatprep.subr.bf16.mxu0 (!%p229_p3), %v1770_v0  ;;  %1524 = vmatprep.mubr.msk.f32.mxu0 (!%p229_p3), %vm1771_vm1, %v1772_v1  ;;  %343 = vst.msk [vmem:[#allocation2] sm:$0x3] (!%p229_p3), %vm342_vm0, %v1772_v1  ;;  %344 = vst.msk [vmem:[#allocation3] sm:$0x3] (!%p229_p3), %vm342_vm0, %v1772_v1  ;;  %vm356_vm2 = vcmask (!%p229_p3), 261120  }
   0x8   : > { %1610 = vmatprep.subr.bf16.mxu1 (!%p229_p3), %v1770_v0  ;;  %1535 = vmatprep.mubr.msk.f32.mxu1 (!%p229_p3), %vm1771_vm1, %v1772_v1  ;;  %s1773_s5 = smov (!%p229_p3), 64   ;;  %s1774_s6 = smov (!%p229_p3), 32  }
   0xe   : > { %s1830_s19 = scalar_select %p291_p4, %s1760_s15, 1  ;;  %v345_v8 = vld [vmem:[#allocation2] sm:$0x3]  ;;  %v346_v14 = vld [vmem:[#allocation3] sm:$0x3] }
   0xf   : > { %s1861_s24 = scalar_select %p351_p5, 7, 0 }
  0x10   : > { %s1474_s20 = sshll.u32 %s1830_s19, 5  ;;  %s1473_s25 = sshll.u32 %s1830_s19, 4 }
  0x11   : > { %s309_s23 = scalar_lea.vmem %s2035_s1, %s1474_s20  ;;  %s1869_s28 = scalar_lea.vmem %s2034_s0, %s1473_s25 }
  0x12   : > { %v347_v2 = vld [vmem:[%s309_s23] sm:$0xff]  ;;  %v348_v3 = vld [vmem:[%s309_s23 + $0x8] sm:$0xff]  ;;  %v349_v4 = vld [vmem:[%s309_s23 + $0x10] sm:$0xff]  ;;  %s1447_s29 = sshll.u32 %s1861_s24, 1  ;;  %s1885_s9 = scalar_lea.vmem %s2036_s2, %s1473_s25 }
  0x13   : > { %v1839_v5 = vpack.c.bf16 %v348_v3, %v347_v2  ;;  %v350_v6 = vld [vmem:[%s309_s23 + $0x18] sm:$0xff]  ;;  %s354_s30 = scalar_lea.vmem %s1869_s28, %s1447_s29  ;;  %s463_s10 = scalar_lea.vmem %s1885_s9, %s1447_s29 }
  0x14   : > { %v1842_v7 = vpack.c.bf16 %v350_v6, %v349_v4  ;;  %v355_v9 = vld [vmem:[%s354_s30] sm:$0x3]  ;;  %s1900_s11 = scalar_select %p351_p5, 6, 1 }
  0x15   : > { %1606 = vmatpush3.bf16.msra.mxu0 %v1839_v5  ;;  %1612 = vmatpush3.bf16.msra.mxu1 %v1839_v5  ;;  %s1919_s20 = scalar_select %p351_p5, 5, 2 }
  0x16   : > { %1607 = vmatprep.subr.bf16.mxu0 %v1770_v0  ;;  %1613 = vmatprep.subr.bf16.mxu1 %v1770_v0  ;;  %s1450_s12 = sshll.u32 %s1900_s11, 1  ;;  %s1775_s15 = smov 96  }
  0x17   : > { %s468_s13 = scalar_lea.vmem %s1869_s28, %s1450_s12  ;;  %s571_s14 = scalar_lea.vmem %s1885_s9, %s1450_s12 }
  0x18   : > { %v469_v29 = vld [vmem:[%s468_s13] sm:$0x3]  ;;  %s1453_s21 = sshll.u32 %s1919_s20, 1 }
  0x19   : > { %1609 = vmatpush3.bf16.msra.mxu0 %v1842_v7  ;;  %1615 = vmatpush3.bf16.msra.mxu1 %v1842_v7  ;;  %s575_s22 = scalar_lea.vmem %s1869_s28, %s1453_s21  ;;  %s678_s23 = scalar_lea.vmem %s1885_s9, %s1453_s21 }
  0x1a   : > { %1616 = vmatprep.subr.bf16.mxu0 %v1770_v0  ;;  %1622 = vmatprep.subr.bf16.mxu1 %v1770_v0  ;;  %v576_v47 = vld [vmem:[%s575_s22] sm:$0x3]  ;;  %s1938_s24 = scalar_select %p351_p5, 4, 3 }
  0x1b   : > { %s1956_s29 = scalar_select %p351_p5, 3, 4 }
  0x1c   : > { %1525 = vmatmul.mubr.msk.f32.vlgmr.msra.gmra.mrb[0].mxu0 %vm356_vm2, %v345_v8  ;;  %s1456_s25 = sshll.u32 %s1938_s24, 1 }
  0x1d   : > { %1618 = vmatpush3.bf16.msra.mxu0 %v1839_v5  ;;  %1546 = vmatprep.mubr.msk.f32.mxu0 %vm1771_vm1, %v1772_v1  ;;  %s682_s26 = scalar_lea.vmem %s1869_s28, %s1456_s25  ;;  %s785_s27 = scalar_lea.vmem %s1885_s9, %s1456_s25 }
  0x1e   : > { %1619 = vmatprep.subr.bf16.mxu0 %v1770_v0  ;;  %v683_v3 = vld [vmem:[%s682_s26] sm:$0x3]  ;;  %s1459_s30 = sshll.u32 %s1956_s29, 1 }
  0x1f   : > { %s789_s7 = scalar_lea.vmem %s1869_s28, %s1459_s30  ;;  %s892_s8 = scalar_lea.vmem %s1885_s9, %s1459_s30 }
  0x21   : > { %1621 = vmatpush3.bf16.msra.mxu0 %v1842_v7 }
  0x22   : > { %1628 = vmatprep.subr.bf16.mxu0 %v1770_v0 }
  0xef   : > { %v426_v10 = vpop.f32.mrb[0].mxu0 }
  0xf0   : > { %v430_v11 = vadd.f32 %v426_v10, %v355_v9  ;;  %v1526_v12 = vpop.f32.mrb[1].mxu0 }
  0xf2   : > { %1682 = vtanh.f32 %v430_v11  ;;  %v1449_v15 = vmul.f32 -1.442695, %v430_v11 }
  0xf4   : > { %1684 = vpow2.f32 %v1449_v15 }
  0xfc   : > { %v1683_v13 = vpop.eup %1682 }
  0xfd   : > { %444 = vrot.lane.b32.xlu0 %v1683_v13, %s1773_s5 }
  0xfe   : > { %v1685_v16 = vpop.eup %1684 }
  0xff   : > { %v434_v17 = vadd.f32 1.0, %v1685_v16 }
 0x101   : > { %439 = vrot.lane.b32.xlu0 %v346_v14, %s1774_s6  ;;  %1686 = vrcp.f32 %v434_v17 }
 0x10b   : > { %v1687_v18 = vpop.eup %1686 }
 0x16f   : > { %v445_v19 = vpop.permute.xlu0 %444 }
 0x170   : > { %v447_v20 = vmul.f32 %v1687_v18, %v445_v19 }
 0x172   : > { %449 = vrot.lane.b32.xlu1 %v447_v20, %s1774_s6 }
 0x173   : > { %v440_v21 = vpop.permute.xlu0 %439 }
 0x174   : > { %v442_v22 = vmul.f32 %v1687_v18, %v440_v21 }
 0x1e4   : > { %v450_v23 = vpop.permute.xlu1 %449 }
 0x1e5   : > { %v452_v24 = vadd.f32 %v450_v23, %v442_v22  ;;  %v790_v23 = vld [vmem:[%s789_s7] sm:$0x3] }
 0x1e7   : > { %1688 = vtanh.f32 %v452_v24 }
 0x1f1   : > { %v1689_v25 = vpop.eup %1688 }
 0x1f2   : > { %455 = vrot.lane.b32.xlu1 %v1689_v25, %s1773_s5 }
 0x264   : > { %v456_v26 = vpop.permute.xlu1 %455 }
 0x265   : > { %v458_v27 = vmul.f32 %v1687_v18, %v456_v26 }
 0x267   : > { %460 = vrot.lane.b32.xlu0 %v458_v27, %s1774_s6 }
 0x2d9   : > { %v461_v28 = vpop.permute.xlu0 %460 }
 0x2da   : > { %465 = vst.msk [vmem:[%s463_s10] sm:$0x3] %vm342_vm0, %v461_v28  ;;  %1536 = vmatmul.mubr.msk.f32.vlgmr.msra.gmra.mrb[0].mxu1 %vm356_vm2, %v461_v28  ;;  %s1974_s10 = scalar_select %p351_p5, 2, 5 }
 0x2db   : > { %1624 = vmatpush3.bf16.msra.mxu1 %v1839_v5  ;;  %1557 = vmatprep.mubr.msk.f32.mxu1 %vm1771_vm1, %v1772_v1 }
 0x2dc   : > { %1625 = vmatprep.subr.bf16.mxu1 %v1770_v0  ;;  %s1462_s11 = sshll.u32 %s1974_s10, 1 }
 0x2dd   : > { %s896_s12 = scalar_lea.vmem %s1869_s28, %s1462_s11  ;;  %s999_s13 = scalar_lea.vmem %s1885_s9, %s1462_s11 }
 0x2df   : > { %1627 = vmatpush3.bf16.msra.mxu1 %v1842_v7 }
 0x2e0   : > { %1634 = vmatprep.subr.bf16.mxu1 %v1770_v0 }
 0x3ad   : > { %v538_v30 = vpop.f32.mrb[0].mxu1 }
 0x3ae   : > { %v542_v31 = vadd.f32 %v538_v30, %v469_v29  ;;  %v1537_v32 = vpop.f32.mrb[1].mxu1 }
 0x3b0   : > { %1690 = vtanh.f32 %v542_v31  ;;  %v1452_v34 = vmul.f32 -1.442695, %v542_v31 }
 0x3b2   : > { %1692 = vpow2.f32 %v1452_v34 }
 0x3ba   : > { %v1691_v33 = vpop.eup %1690 }
 0x3bb   : > { %552 = vrot.lane.b32.xlu1 %v1691_v33, %s1773_s5 }
 0x3bc   : > { %v1693_v35 = vpop.eup %1692 }
 0x3bd   : > { %v546_v36 = vadd.f32 1.0, %v1693_v35 }
 0x3bf   : > { %1694 = vrcp.f32 %v546_v36 }
 0x3c9   : > { %v1695_v37 = vpop.eup %1694 }
 0x3ca   : > { %v550_v40 = vmul.f32 %v1695_v37, %v452_v24 }
 0x42d   : > { %v553_v38 = vpop.permute.xlu1 %552 }
 0x42e   : > { %v555_v39 = vmul.f32 %v1695_v37, %v553_v38 }
 0x430   : > { %557 = vrot.lane.b32.xlu0 %v555_v39, %s1774_s6 }
 0x4a2   : > { %v558_v41 = vpop.permute.xlu0 %557 }
 0x4a3   : > { %v560_v42 = vadd.f32 %v558_v41, %v550_v40  ;;  %v897_v41 = vld [vmem:[%s896_s12] sm:$0x3] }
 0x4a5   : > { %1696 = vtanh.f32 %v560_v42 }
 0x4af   : > { %v1697_v43 = vpop.eup %1696 }
 0x4b0   : > { %563 = vrot.lane.b32.xlu1 %v1697_v43, %s1773_s5 }
 0x522   : > { %v564_v44 = vpop.permute.xlu1 %563 }
 0x523   : > { %v566_v45 = vmul.f32 %v1695_v37, %v564_v44 }
 0x525   : > { %568 = vrot.lane.b32.xlu0 %v566_v45, %s1774_s6 }
 0x597   : > { %v569_v46 = vpop.permute.xlu0 %568 }
 0x598   : > { %572 = vst.msk [vmem:[%s571_s14] sm:$0x3] %vm342_vm0, %v569_v46  ;;  %1547 = vmatmul.mubr.msk.f32.vlgmr.msra.gmra.mrb[2].mxu0 %vm356_vm2, %v569_v46  ;;  %s1987_s14 = scalar_select %p351_p5, 1, 6 }
 0x599   : > { %1630 = vmatpush3.bf16.msra.mxu0 %v1839_v5  ;;  %1568 = vmatprep.mubr.msk.f32.mxu0 %vm1771_vm1, %v1772_v1 }
 0x59a   : > { %1631 = vmatprep.subr.bf16.mxu0 %v1770_v0  ;;  %s1465_s20 = sshll.u32 %s1987_s14, 1 }
 0x59b   : > { %s1003_s21 = scalar_lea.vmem %s1869_s28, %s1465_s20  ;;  %s1106_s22 = scalar_lea.vmem %s1885_s9, %s1465_s20 }
 0x59d   : > { %1633 = vmatpush3.bf16.msra.mxu0 %v1842_v7 }
 0x59e   : > { %1640 = vmatprep.subr.bf16.mxu0 %v1770_v0 }
 0x66b   : > { %v645_v48 = vpop.f32.mrb[2].mxu0 }
 0x66c   : > { %v649_v49 = vadd.f32 %v645_v48, %v576_v47  ;;  %v1548_v50 = vpop.f32.mrb[3].mxu0 }
 0x66e   : > { %1698 = vtanh.f32 %v649_v49  ;;  %v1455_v52 = vmul.f32 -1.442695, %v649_v49 }
 0x670   : > { %1700 = vpow2.f32 %v1455_v52 }
 0x678   : > { %v1699_v51 = vpop.eup %1698 }
 0x679   : > { %659 = vrot.lane.b32.xlu1 %v1699_v51, %s1773_s5 }
 0x67a   : > { %v1701_v53 = vpop.eup %1700 }
 0x67b   : > { %v653_v54 = vadd.f32 1.0, %v1701_v53 }
 0x67d   : > { %1702 = vrcp.f32 %v653_v54 }
 0x687   : > { %v1703_v55 = vpop.eup %1702 }
 0x688   : > { %v657_v58 = vmul.f32 %v1703_v55, %v560_v42 }
 0x6eb   : > { %v660_v56 = vpop.permute.xlu1 %659 }
 0x6ec   : > { %v662_v57 = vmul.f32 %v1703_v55, %v660_v56 }
 0x6ee   : > { %664 = vrot.lane.b32.xlu0 %v662_v57, %s1774_s6 }
 0x760   : > { %v665_v59 = vpop.permute.xlu0 %664 }
 0x761   : > { %v667_v60 = vadd.f32 %v665_v59, %v657_v58 }
 0x763   : > { %1704 = vtanh.f32 %v667_v60 }
 0x76d   : > { %v1705_v61 = vpop.eup %1704 }
 0x76e   : > { %670 = vrot.lane.b32.xlu1 %v1705_v61, %s1773_s5 }
 0x7e0   : > { %v671_v62 = vpop.permute.xlu1 %670 }
 0x7e1   : > { %v673_v63 = vmul.f32 %v1703_v55, %v671_v62  ;;  %v1004_v55 = vld [vmem:[%s1003_s21] sm:$0x3] }
 0x7e3   : > { %675 = vrot.lane.b32.xlu0 %v673_v63, %s1774_s6 }
 0x855   : > { %v676_v2 = vpop.permute.xlu0 %675 }
 0x856   : > { %679 = vst.msk [vmem:[%s678_s23] sm:$0x3] %vm342_vm0, %v676_v2  ;;  %1558 = vmatmul.mubr.msk.f32.vlgmr.msra.gmra.mrb[2].mxu1 %vm356_vm2, %v676_v2  ;;  %s2000_s23 = scalar_select %p351_p5, 0, 7 }
 0x857   : > { %1636 = vmatpush3.bf16.msra.mxu1 %v1839_v5  ;;  %1579 = vmatprep.mubr.msk.f32.mxu1 %vm1771_vm1, %v1772_v1 }
 0x858   : > { %1637 = vmatprep.subr.bf16.mxu1 %v1770_v0  ;;  %s1468_s24 = sshll.u32 %s2000_s23, 1 }
 0x859   : > { %s1110_s25 = scalar_lea.vmem %s1869_s28, %s1468_s24  ;;  %s1445_s28 = sshll.u32 %s1830_s19, 1 }
 0x85a   : > { %s337_s29 = scalar_lea.vmem %s2038_s4, %s1445_s28  ;;  %s1213_s30 = scalar_lea.vmem %s1885_s9, %s1468_s24 }
 0x85b   : > { %1639 = vmatpush3.bf16.msra.mxu1 %v1842_v7 }
 0x85c   : > { %1646 = vmatprep.subr.bf16.mxu1 %v1770_v0 }
 0x929   : > { %v752_v4 = vpop.f32.mrb[2].mxu1 }
 0x92a   : > { %v756_v6 = vadd.f32 %v752_v4, %v683_v3  ;;  %v1559_v8 = vpop.f32.mrb[3].mxu1 }
 0x92c   : > { %1706 = vtanh.f32 %v756_v6  ;;  %v1458_v10 = vmul.f32 -1.442695, %v756_v6 }
 0x92e   : > { %1708 = vpow2.f32 %v1458_v10 }
 0x936   : > { %v1707_v9 = vpop.eup %1706 }
 0x937   : > { %766 = vrot.lane.b32.xlu1 %v1707_v9, %s1773_s5 }
 0x938   : > { %v1709_v11 = vpop.eup %1708 }
 0x939   : > { %v760_v12 = vadd.f32 1.0, %v1709_v11 }
 0x93b   : > { %1710 = vrcp.f32 %v760_v12 }
 0x945   : > { %v1711_v13 = vpop.eup %1710 }
 0x946   : > { %v764_v16 = vmul.f32 %v1711_v13, %v667_v60 }
 0x9a9   : > { %v767_v14 = vpop.permute.xlu1 %766 }
 0x9aa   : > { %v769_v15 = vmul.f32 %v1711_v13, %v767_v14 }
 0x9ac   : > { %771 = vrot.lane.b32.xlu0 %v769_v15, %s1774_s6 }
 0xa1e   : > { %v772_v17 = vpop.permute.xlu0 %771 }
 0xa1f   : > { %v774_v18 = vadd.f32 %v772_v17, %v764_v16 }
 0xa21   : > { %1712 = vtanh.f32 %v774_v18 }
 0xa2b   : > { %v1713_v19 = vpop.eup %1712 }
 0xa2c   : > { %777 = vrot.lane.b32.xlu1 %v1713_v19, %s1773_s5 }
 0xa9e   : > { %v778_v20 = vpop.permute.xlu1 %777 }
 0xa9f   : > { %v780_v21 = vmul.f32 %v1711_v13, %v778_v20  ;;  %v1111_v13 = vld [vmem:[%s1110_s25] sm:$0x3] }
 0xaa1   : > { %782 = vrot.lane.b32.xlu0 %v780_v21, %s1774_s6 }
 0xb13   : > { %v783_v22 = vpop.permute.xlu0 %782 }
 0xb14   : > { %786 = vst.msk [vmem:[%s785_s27] sm:$0x3] %vm342_vm0, %v783_v22  ;;  %1569 = vmatmul.mubr.msk.f32.vlgmr.msra.gmra.mrb[4].mxu0 %vm356_vm2, %v783_v22 }
 0xb15   : > { %1642 = vmatpush3.bf16.msra.mxu0 %v1839_v5  ;;  %1590 = vmatprep.mubr.msk.f32.mxu0 %vm1771_vm1, %v1772_v1 }
 0xb16   : > { %1643 = vmatprep.subr.bf16.mxu0 %v1770_v0 }
 0xb19   : > { %1645 = vmatpush3.bf16.msra.mxu0 %v1842_v7 }
 0xbe7   : > { %v859_v24 = vpop.f32.mrb[4].mxu0 }
 0xbe8   : > { %v863_v25 = vadd.f32 %v859_v24, %v790_v23  ;;  %v1570_v26 = vpop.f32.mrb[5].mxu0 }
 0xbea   : > { %1714 = vtanh.f32 %v863_v25  ;;  %v1461_v28 = vmul.f32 -1.442695, %v863_v25 }
 0xbec   : > { %1716 = vpow2.f32 %v1461_v28 }
 0xbf4   : > { %v1715_v27 = vpop.eup %1714 }
 0xbf5   : > { %873 = vrot.lane.b32.xlu1 %v1715_v27, %s1773_s5 }
 0xbf6   : > { %v1717_v29 = vpop.eup %1716 }
 0xbf7   : > { %v867_v30 = vadd.f32 1.0, %v1717_v29 }
 0xbf9   : > { %1718 = vrcp.f32 %v867_v30 }
 0xc03   : > { %v1719_v31 = vpop.eup %1718 }
 0xc04   : > { %v871_v34 = vmul.f32 %v1719_v31, %v774_v18 }
 0xc67   : > { %v874_v32 = vpop.permute.xlu1 %873 }
 0xc68   : > { %v876_v33 = vmul.f32 %v1719_v31, %v874_v32 }
 0xc6a   : > { %878 = vrot.lane.b32.xlu0 %v876_v33, %s1774_s6 }
 0xcdc   : > { %v879_v35 = vpop.permute.xlu0 %878 }
 0xcdd   : > { %v881_v36 = vadd.f32 %v879_v35, %v871_v34 }
 0xcdf   : > { %1720 = vtanh.f32 %v881_v36 }
 0xce9   : > { %v1721_v37 = vpop.eup %1720 }
 0xcea   : > { %884 = vrot.lane.b32.xlu1 %v1721_v37, %s1773_s5 }
 0xd5c   : > { %v885_v38 = vpop.permute.xlu1 %884 }
 0xd5d   : > { %v887_v39 = vmul.f32 %v1719_v31, %v885_v38 }
 0xd5f   : > { %889 = vrot.lane.b32.xlu0 %v887_v39, %s1774_s6 }
 0xdd1   : > { %v890_v40 = vpop.permute.xlu0 %889 }
 0xdd2   : > { %893 = vst.msk [vmem:[%s892_s8] sm:$0x3] %vm342_vm0, %v890_v40  ;;  %1580 = vmatmul.mubr.msk.f32.vlgmr.msra.gmra.mrb[4].mxu1 %vm356_vm2, %v890_v40  ;;  %s333_s8 = scalar_lea.vmem %s2037_s3, %s1445_s28 }
 0xdd3   : > { %1648 = vmatpush3.bf16.msra.mxu1 %v1839_v5  ;;  %1601 = vmatprep.mubr.msk.f32.mxu1 %vm1771_vm1, %v1772_v1 }
 0xdd4   : > { %1649 = vmatprep.subr.bf16.mxu1 %v1770_v0 }
 0xdd7   : > { %1651 = vmatpush3.bf16.msra.mxu1 %v1842_v7 }
 0xea5   : > { %v966_v42 = vpop.f32.mrb[4].mxu1 }
 0xea6   : > { %v970_v43 = vadd.f32 %v966_v42, %v897_v41  ;;  %v1581_v44 = vpop.f32.mrb[5].mxu1 }
 0xea8   : > { %1722 = vtanh.f32 %v970_v43  ;;  %v1464_v5 = vmul.f32 -1.442695, %v970_v43 }
 0xeaa   : > { %1724 = vpow2.f32 %v1464_v5 }
 0xeb2   : > { %v1723_v45 = vpop.eup %1722 }
 0xeb3   : > { %980 = vrot.lane.b32.xlu1 %v1723_v45, %s1773_s5 }
 0xeb4   : > { %v1725_v1 = vpop.eup %1724 }
 0xeb5   : > { %v974_v0 = vadd.f32 1.0, %v1725_v1 }
 0xeb7   : > { %1726 = vrcp.f32 %v974_v0 }
 0xec1   : > { %v1727_v7 = vpop.eup %1726 }
 0xec2   : > { %v978_v48 = vmul.f32 %v1727_v7, %v881_v36 }
 0xf25   : > { %v981_v46 = vpop.permute.xlu1 %980 }
 0xf26   : > { %v983_v47 = vmul.f32 %v1727_v7, %v981_v46 }
 0xf28   : > { %985 = vrot.lane.b32.xlu0 %v983_v47, %s1774_s6 }
 0xf9a   : > { %v986_v49 = vpop.permute.xlu0 %985 }
 0xf9b   : > { %v988_v50 = vadd.f32 %v986_v49, %v978_v48 }
 0xf9d   : > { %1728 = vtanh.f32 %v988_v50 }
 0xfa7   : > { %v1729_v51 = vpop.eup %1728 }
 0xfa8   : > { %991 = vrot.lane.b32.xlu1 %v1729_v51, %s1773_s5 }
0x101a   : > { %v992_v52 = vpop.permute.xlu1 %991 }
0x101b   : > { %v994_v53 = vmul.f32 %v1727_v7, %v992_v52 }
0x101d   : > { %996 = vrot.lane.b32.xlu0 %v994_v53, %s1774_s6 }
0x108f   : > { %v997_v54 = vpop.permute.xlu0 %996 }
0x1090   : > { %1000 = vst.msk [vmem:[%s999_s13] sm:$0x3] %vm342_vm0, %v997_v54  ;;  %1591 = vmatmul.mubr.msk.f32.vlgmr.msra.gmra.mrb[6].mxu0 %vm356_vm2, %v997_v54 }
0x1163   : > { %v1073_v56 = vpop.f32.mrb[6].mxu0 }
0x1164   : > { %v1077_v57 = vadd.f32 %v1073_v56, %v1004_v55  ;;  %v1592_v58 = vpop.f32.mrb[7].mxu0 }
0x1166   : > { %1730 = vtanh.f32 %v1077_v57  ;;  %v1467_v60 = vmul.f32 -1.442695, %v1077_v57 }
0x1168   : > { %1732 = vpow2.f32 %v1467_v60 }
0x1170   : > { %v1731_v59 = vpop.eup %1730 }
0x1171   : > { %1087 = vrot.lane.b32.xlu1 %v1731_v59, %s1773_s5 }
0x1172   : > { %v1733_v61 = vpop.eup %1732 }
0x1173   : > { %v1081_v62 = vadd.f32 1.0, %v1733_v61 }
0x1175   : > { %1734 = vrcp.f32 %v1081_v62 }
0x117f   : > { %v1735_v63 = vpop.eup %1734 }
0x1180   : > { %v1085_v4 = vmul.f32 %v1735_v63, %v988_v50 }
0x11e3   : > { %v1088_v2 = vpop.permute.xlu1 %1087 }
0x11e4   : > { %v1090_v3 = vmul.f32 %v1735_v63, %v1088_v2 }
0x11e6   : > { %1092 = vrot.lane.b32.xlu0 %v1090_v3, %s1774_s6 }
0x1258   : > { %v1093_v6 = vpop.permute.xlu0 %1092 }
0x1259   : > { %v1095_v8 = vadd.f32 %v1093_v6, %v1085_v4 }
0x125b   : > { %1736 = vtanh.f32 %v1095_v8 }
0x1265   : > { %v1737_v9 = vpop.eup %1736 }
0x1266   : > { %1098 = vrot.lane.b32.xlu1 %v1737_v9, %s1773_s5 }
0x12d8   : > { %v1099_v10 = vpop.permute.xlu1 %1098 }
0x12d9   : > { %v1101_v11 = vmul.f32 %v1735_v63, %v1099_v10 }
0x12db   : > { %1103 = vrot.lane.b32.xlu0 %v1101_v11, %s1774_s6 }
0x134d   : > { %v1104_v12 = vpop.permute.xlu0 %1103 }
0x134e   : > { %1107 = vst.msk [vmem:[%s1106_s22] sm:$0x3] %vm342_vm0, %v1104_v12  ;;  %1602 = vmatmul.mubr.msk.f32.vlgmr.msra.gmra.mrb[6].mxu1 %vm356_vm2, %v1104_v12 }
0x1421   : > { %v1180_v14 = vpop.f32.mrb[6].mxu1 }
0x1422   : > { %v1184_v15 = vadd.f32 %v1180_v14, %v1111_v13  ;;  %v1603_v16 = vpop.f32.mrb[7].mxu1 }
0x1424   : > { %1738 = vtanh.f32 %v1184_v15  ;;  %v1470_v18 = vmul.f32 -1.442695, %v1184_v15 }
0x1426   : > { %1740 = vpow2.f32 %v1470_v18 }
0x142e   : > { %v1739_v17 = vpop.eup %1738 }
0x142f   : > { %1194 = vrot.lane.b32.xlu1 %v1739_v17, %s1773_s5 }
0x1430   : > { %v1741_v19 = vpop.eup %1740 }
0x1431   : > { %v1188_v20 = vadd.f32 1.0, %v1741_v19 }
0x1433   : > { %1742 = vrcp.f32 %v1188_v20 }
0x143d   : > { %v1743_v21 = vpop.eup %1742 }
0x143e   : > { %v1192_v24 = vmul.f32 %v1743_v21, %v1095_v8 }
0x14a1   : > { %v1195_v22 = vpop.permute.xlu1 %1194 }
0x14a2   : > { %v1197_v23 = vmul.f32 %v1743_v21, %v1195_v22 }
0x14a4   : > { %1199 = vrot.lane.b32.xlu0 %v1197_v23, %s1774_s6 }
0x1516   : > { %v1200_v25 = vpop.permute.xlu0 %1199 }
0x1517   : > { %v1202_v26 = vadd.f32 %v1200_v25, %v1192_v24 }
0x1519   : > { %1744 = vtanh.f32 %v1202_v26 }
0x1523   : > { %v1745_v27 = vpop.eup %1744 }
0x1524   : > { %1205 = vrot.lane.b32.xlu1 %v1745_v27, %s1773_s5 }
0x1528   : > { %1217 = vrot.lane.b32.xlu1 %v1202_v26, %s1775_s15 }
0x1596   : > { %v1206_v28 = vpop.permute.xlu1 %1205 }
0x1597   : > { %v1208_v29 = vmul.f32 %v1743_v21, %v1206_v28 }
0x1599   : > { %1210 = vrot.lane.b32.xlu0 %v1208_v29, %s1774_s6 }
0x159a   : > { %v1218_v30 = vpop.permute.xlu1 %1217 }
0x159b   : > { %1220 = vst.msk [vmem:[#allocation3] sm:$0x3] %vm342_vm0, %v1218_v30  ;;  %1225 = vst.msk [vmem:[%s337_s29] sm:$0x3] %vm342_vm0, %v1218_v30 }
0x160b   : > { %v1211_v31 = vpop.permute.xlu0 %1210 }
0x160c   : > { %1214 = vst.msk [vmem:[%s1213_s30] sm:$0x3] %vm342_vm0, %v1211_v31  ;;  %1215 = vst.msk [vmem:[#allocation2] sm:$0x3] %vm342_vm0, %v1211_v31 }
0x160d   : > { %1224 = vst.msk [vmem:[%s333_s8] sm:$0x3] %vm342_vm0, %v1211_v31 }
0x160e PF: > { %s15_s17 = sadd.s32 1, %s1768_s17   ;;  %s2039_s15 = smov %s1764_s16 }
0x160f   : > { %p12_p6 = scmp.ge.s32.totalorder %s15_s17, 4   ;;  %s2040_s16 = smov %s2042_s18 }
0x1611   :  { %14 = sbr.rel (!%p12_p6) target bundleno = 2 (0x2), region = 109 }

</bundles_post_ra>
